<compile_context>
chip_gen: v7x
topology: tpu7x:2x2x1
jax: 0.10.0
libtpu: 0.0.40
codegen_flags: <defaults>
</compile_context>

<pallas_src>
import functools

import jax
import jax.numpy as jnp
from jax.experimental import pallas as pl
from jax.experimental.pallas import tpu as pltpu

SELU_SCALE = 1.0507009873554804934193349852946
SELU_ALPHA = 1.6732632423543772848170429916717

SUBLANE = 8


def _selu(x):
    return SELU_SCALE * jnp.where(x > 0, x, SELU_ALPHA * (jnp.exp(x) - 1.0))


def _round_up(x, m):
    return (x + m - 1) // m * m


def g_full_kernel(half, hidden, compute_dtype,
                  y_ref, w1s_ref, b1s_ref, wps_ref, w2_ref, b2_ref,
                  w3_ref, b3_ref, w4_ref, b4_ref, out_ref):
    H = hidden

    # Raw activation block; augmented product term built in-kernel (f32 VPU).
    y32 = y_ref[...].astype(jnp.float32)                 # (TB, input_size)
    prod32 = y32[:, :half] * y32[:, half:]               # (TB, half)

    y_c = y32.astype(compute_dtype)
    prod_c = prod32.astype(compute_dtype)

    # Fused layer 1 + skip:
    #   columns [0, H)   : fc1(y)                (gets SELU)
    #   columns [H, 2H)  : skip(cat(y, prod))    (no SELU)
    # as two small MXU dots sharing one f32 accumulator.
    t1 = (jnp.dot(y_c, w1s_ref[...], preferred_element_type=jnp.float32)
          + jnp.dot(prod_c, wps_ref[...], preferred_element_type=jnp.float32)
          + b1s_ref[...])                                 # (TB, 2H) f32

    h = _selu(t1[:, :H])                                  # selu(fc1(y))
    skip = t1[:, H:]                                      # skip term, no SELU
    # TODO(synk): if the lane split at offset H ever shows up as a hot
    # relayout in the bundle dump, fall back to two separate layer-1 dots.

    # x = selu(fc2(x)) + skip
    h = (_selu(jnp.dot(h.astype(compute_dtype), w2_ref[...],
                       preferred_element_type=jnp.float32) + b2_ref[...])
         + skip)

    # x = selu(fc3(x))
    h = _selu(jnp.dot(h.astype(compute_dtype), w3_ref[...],
                      preferred_element_type=jnp.float32) + b3_ref[...])

    # x = fc4(x)  -- natural-width (TB, out_size) store, no lane padding.
    out_ref[...] = (jnp.dot(h.astype(compute_dtype), w4_ref[...],
                            preferred_element_type=jnp.float32)
                    + b4_ref[...]).astype(out_ref.dtype)


def g_full_forward(y, params, *, tb=4096, use_bf16=True, out_dtype=None):
    """y: (B, input_size) float32; params: transposed weights (in, out)."""
    B, input_size = y.shape
    half = input_size // 2
    hidden = params["w1"].shape[1]
    out_size = params["w4"].shape[1]
    out_dtype = y.dtype if out_dtype is None else out_dtype
    compute_dtype = jnp.bfloat16 if use_bf16 else jnp.float32

    # ---- weight plumbing (tiny, done once per call) -------------------------
    # Fused layer-1 + skip weights:
    #   w1s : (input_size, 2H) = [ w1 | wskip rows driven by y            ]
    #   wps : (half,       2H) = [ 0  | wskip rows driven by y_lo * y_hi  ]
    w1s = jnp.concatenate([params["w1"], params["wskip"][:input_size]], axis=1)
    wps = jnp.concatenate([jnp.zeros((half, hidden), jnp.float32),
                           params["wskip"][input_size:]], axis=1)
    b1s = jnp.concatenate([params["b1"], jnp.zeros((1, hidden), jnp.float32)],
                          axis=1)

    def cw(w):  # matmul weights go to the MXU compute dtype; biases stay f32
        return w.astype(compute_dtype)

    weights = (cw(w1s), b1s, cw(wps),
               cw(params["w2"]), params["b2"],
               cw(params["w3"]), params["b3"],
               cw(params["w4"]), params["b4"])

    # ---- batch tiling --------------------------------------------------------
    # Cap the tile so the grid has >= 2 steps when the batch allows it
    # (v7x: 2 TensorCores share the "parallel" grid axis).
    tb = min(tb, _round_up(max(pl.cdiv(B, 2), 1), SUBLANE))
    tb = _round_up(max(tb, SUBLANE), SUBLANE)
    b_pad = _round_up(B, tb)
    y_in = y if b_pad == B else jnp.pad(y, ((0, b_pad - B), (0, 0)))
    grid = (b_pad // tb,)

    def const_spec(a):
        # full-block, VMEM-resident across all grid iterations
        return pl.BlockSpec(a.shape, lambda i: (0,) * a.ndim)

    out = pl.pallas_call(
        functools.partial(g_full_kernel, half, hidden, compute_dtype),
        out_shape=jax.ShapeDtypeStruct((b_pad, out_size), out_dtype),
        grid=grid,
        in_specs=[pl.BlockSpec((tb, input_size), lambda i: (i, 0))]
                 + [const_spec(a) for a in weights],
        out_specs=pl.BlockSpec((tb, out_size), lambda i: (i, 0)),
        compiler_params=pltpu.CompilerParams(
            dimension_semantics=("parallel",),          # 2 TCs on v7x
            vmem_limit_bytes=48 * 1024 * 1024),
    )(y_in, *weights)

    return out[:B] if b_pad != B else out


def init_params(key, input_size, hidden_size, output_size):
    half = input_size // 2
    ks = jax.random.split(key, 9)
    scale = 0.1

    def w(k, shape):
        return (scale * jax.random.normal(k, shape)).astype(jnp.float32)

    # Weights stored (in_features, out_features) == PyTorch W.T
    return {
        "w1": w(ks[0], (input_size, hidden_size)),
        "b1": w(ks[1], (1, hidden_size)),
        "w2": w(ks[2], (hidden_size, hidden_size)),
        "b2": w(ks[3], (1, hidden_size)),
        "w3": w(ks[4], (hidden_size, hidden_size)),
        "b3": w(ks[5], (1, hidden_size)),
        "w4": w(ks[6], (hidden_size, output_size)),
        "b4": w(ks[7], (1, output_size)),
        "wskip": w(ks[8], (3 * half, hidden_size)),   # bias=False
    }


def g_full_reference(y, p):
    """Pure-JAX reference matching the PyTorch forward."""
    half = y.shape[1] // 2
    x = _selu(y @ p["w1"] + p["b1"])
    skip_in = jnp.concatenate([y, y[:, :half] * y[:, half:]], axis=1)
    x = _selu(x @ p["w2"] + p["b2"]) + skip_in @ p["wskip"]
    x = _selu(x @ p["w3"] + p["b3"])
    return x @ p["w4"] + p["b4"]


if __name__ == "__main__":
    input_size = 8     # must be even (half_input_size = input_size // 2)
    hidden_size = 32
    output_size = 4
    batch = 12         # intentionally not a multiple of 8 to exercise padding

    key = jax.random.PRNGKey(0)
    k_y, k_p = jax.random.split(key)
    y = jax.random.normal(k_y, (batch, input_size), dtype=jnp.float32)
    params = init_params(k_p, input_size, hidden_size, output_size)

    ref = g_full_reference(y, params)

    # Exact-parity path (f32 MXU operands), tb=8 -> 2-step pipelined grid.
    out_f32 = jax.block_until_ready(
        g_full_forward(y, params, tb=8, use_bf16=False))
    assert out_f32.shape == (batch, output_size)
    assert jnp.allclose(out_f32, ref, atol=1e-5, rtol=1e-5)

    # Fast path: bf16 MXU operands with f32 accumulation (looser tolerance).
    out_bf16 = jax.block_until_ready(
        g_full_forward(y, params, tb=8, use_bf16=True))
    assert out_bf16.shape == (batch, output_size)
    assert jnp.allclose(out_bf16, ref, atol=5e-2, rtol=5e-2)

    print("KERNEL_OK")
</pallas_src>

<mosaic_0001>
module attributes {stable_mosaic.version = 11 : i64} {
  func.func @g_full_kernel(%arg0: i32, %arg1: memref<8x8xf32, #tpu.memory_space<vmem>>, %arg2: memref<8x64xf32, #tpu.memory_space<vmem>>, %arg3: memref<1x64xf32, #tpu.memory_space<vmem>>, %arg4: memref<4x64xf32, #tpu.memory_space<vmem>>, %arg5: memref<32x32xf32, #tpu.memory_space<vmem>>, %arg6: memref<1x32xf32, #tpu.memory_space<vmem>>, %arg7: memref<32x32xf32, #tpu.memory_space<vmem>>, %arg8: memref<1x32xf32, #tpu.memory_space<vmem>>, %arg9: memref<32x4xf32, #tpu.memory_space<vmem>>, %arg10: memref<1x4xf32, #tpu.memory_space<vmem>>, %arg11: memref<8x4xf32, #tpu.memory_space<vmem>>) attributes {dimension_semantics = [#tpu.dimension_semantics<parallel>], iteration_bounds = array<i64: 2>, scalar_prefetch = 0 : i64, scratch_operands = 0 : i64, tpu.core_type = #tpu.core_type<tc>, window_params = [{transform_indices = @transform_0, window_bounds = array<i64: 8, 8>}, {pipeline_mode = #tpu.pipeline_mode<synchronous>, transform_indices = @transform_1, window_bounds = array<i64: 8, 64>}, {pipeline_mode = #tpu.pipeline_mode<synchronous>, transform_indices = @transform_2, window_bounds = array<i64: 1, 64>}, {pipeline_mode = #tpu.pipeline_mode<synchronous>, transform_indices = @transform_3, window_bounds = array<i64: 4, 64>}, {pipeline_mode = #tpu.pipeline_mode<synchronous>, transform_indices = @transform_4, window_bounds = array<i64: 32, 32>}, {pipeline_mode = #tpu.pipeline_mode<synchronous>, transform_indices = @transform_5, window_bounds = array<i64: 1, 32>}, {pipeline_mode = #tpu.pipeline_mode<synchronous>, transform_indices = @transform_6, window_bounds = array<i64: 32, 32>}, {pipeline_mode = #tpu.pipeline_mode<synchronous>, transform_indices = @transform_7, window_bounds = array<i64: 1, 32>}, {pipeline_mode = #tpu.pipeline_mode<synchronous>, transform_indices = @transform_8, window_bounds = array<i64: 32, 4>}, {pipeline_mode = #tpu.pipeline_mode<synchronous>, transform_indices = @transform_9, window_bounds = array<i64: 1, 4>}, {transform_indices = @transform_10, window_bounds = array<i64: 8, 4>}]} {
    %c0 = arith.constant 0 : index
    %c0_0 = arith.constant 0 : index
    %0 = vector.load %arg1[%c0, %c0_0] : memref<8x8xf32, #tpu.memory_space<vmem>>, vector<8x8xf32>
    %1 = vector.extract_strided_slice %0 {offsets = [0, 0], sizes = [8, 4], strides = [1, 1]} : vector<8x8xf32> to vector<8x4xf32>
    %2 = vector.extract_strided_slice %0 {offsets = [0, 4], sizes = [8, 4], strides = [1, 1]} : vector<8x8xf32> to vector<8x4xf32>
    %3 = arith.mulf %1, %2 : vector<8x4xf32>
    %c0_1 = arith.constant 0 : index
    %c0_2 = arith.constant 0 : index
    %4 = vector.load %arg2[%c0_1, %c0_2] : memref<8x64xf32, #tpu.memory_space<vmem>>, vector<8x64xf32>
    %cst = arith.constant dense<0.000000e+00> : vector<8x64xf32>
    %5 = tpu.matmul %0, %4, %cst {dimension_numbers = #tpu.dot_dimension_numbers<[1], [0], [0], [1], [0, 0, 1, 1], [], []>} : vector<8x8xf32>, vector<8x64xf32>, vector<8x64xf32> -> vector<8x64xf32>
    %c0_3 = arith.constant 0 : index
    %c0_4 = arith.constant 0 : index
    %6 = vector.load %arg4[%c0_3, %c0_4] : memref<4x64xf32, #tpu.memory_space<vmem>>, vector<4x64xf32>
    %cst_5 = arith.constant dense<0.000000e+00> : vector<8x64xf32>
    %7 = tpu.matmul %3, %6, %cst_5 {dimension_numbers = #tpu.dot_dimension_numbers<[1], [0], [0], [1], [0, 0, 1, 1], [], []>} : vector<8x4xf32>, vector<4x64xf32>, vector<8x64xf32> -> vector<8x64xf32>
    %8 = arith.addf %5, %7 : vector<8x64xf32>
    %c0_6 = arith.constant 0 : index
    %c0_7 = arith.constant 0 : index
    %9 = vector.load %arg3[%c0_6, %c0_7] : memref<1x64xf32, #tpu.memory_space<vmem>>, vector<1x64xf32>
    %10 = vector.broadcast %9 : vector<1x64xf32> to vector<8x64xf32>
    %11 = arith.addf %8, %10 : vector<8x64xf32>
    %12 = vector.extract_strided_slice %11 {offsets = [0, 0], sizes = [8, 32], strides = [1, 1]} : vector<8x64xf32> to vector<8x32xf32>
    %cst_8 = arith.constant 0.000000e+00 : f32
    %13 = vector.broadcast %cst_8 : f32 to vector<8x32xf32>
    %14 = arith.cmpf ogt, %12, %13 : vector<8x32xf32>
    %15 = math.exp %12 : vector<8x32xf32>
    %cst_9 = arith.constant 1.000000e+00 : f32
    %16 = vector.broadcast %cst_9 : f32 to vector<8x32xf32>
    %17 = arith.subf %15, %16 : vector<8x32xf32>
    %cst_10 = arith.constant 1.67326319 : f32
    %18 = vector.broadcast %cst_10 : f32 to vector<8x32xf32>
    %19 = arith.mulf %18, %17 : vector<8x32xf32>
    %20 = arith.select %14, %12, %19 : vector<8x32xi1>, vector<8x32xf32>
    %cst_11 = arith.constant 1.05070102 : f32
    %21 = vector.broadcast %cst_11 : f32 to vector<8x32xf32>
    %22 = arith.mulf %21, %20 : vector<8x32xf32>
    %23 = vector.extract_strided_slice %11 {offsets = [0, 32], sizes = [8, 32], strides = [1, 1]} : vector<8x64xf32> to vector<8x32xf32>
    %c0_12 = arith.constant 0 : index
    %c0_13 = arith.constant 0 : index
    %24 = vector.load %arg5[%c0_12, %c0_13] : memref<32x32xf32, #tpu.memory_space<vmem>>, vector<32x32xf32>
    %cst_14 = arith.constant dense<0.000000e+00> : vector<8x32xf32>
    %25 = tpu.matmul %22, %24, %cst_14 {dimension_numbers = #tpu.dot_dimension_numbers<[1], [0], [0], [1], [0, 0, 1, 1], [], []>} : vector<8x32xf32>, vector<32x32xf32>, vector<8x32xf32> -> vector<8x32xf32>
    %c0_15 = arith.constant 0 : index
    %c0_16 = arith.constant 0 : index
    %26 = vector.load %arg6[%c0_15, %c0_16] : memref<1x32xf32, #tpu.memory_space<vmem>>, vector<1x32xf32>
    %27 = vector.broadcast %26 : vector<1x32xf32> to vector<8x32xf32>
    %28 = arith.addf %25, %27 : vector<8x32xf32>
    %cst_17 = arith.constant 0.000000e+00 : f32
    %29 = vector.broadcast %cst_17 : f32 to vector<8x32xf32>
    %30 = arith.cmpf ogt, %28, %29 : vector<8x32xf32>
    %31 = math.exp %28 : vector<8x32xf32>
    %cst_18 = arith.constant 1.000000e+00 : f32
    %32 = vector.broadcast %cst_18 : f32 to vector<8x32xf32>
    %33 = arith.subf %31, %32 : vector<8x32xf32>
    %cst_19 = arith.constant 1.67326319 : f32
    %34 = vector.broadcast %cst_19 : f32 to vector<8x32xf32>
    %35 = arith.mulf %34, %33 : vector<8x32xf32>
    %36 = arith.select %30, %28, %35 : vector<8x32xi1>, vector<8x32xf32>
    %cst_20 = arith.constant 1.05070102 : f32
    %37 = vector.broadcast %cst_20 : f32 to vector<8x32xf32>
    %38 = arith.mulf %37, %36 : vector<8x32xf32>
    %39 = arith.addf %38, %23 : vector<8x32xf32>
    %c0_21 = arith.constant 0 : index
    %c0_22 = arith.constant 0 : index
    %40 = vector.load %arg7[%c0_21, %c0_22] : memref<32x32xf32, #tpu.memory_space<vmem>>, vector<32x32xf32>
    %cst_23 = arith.constant dense<0.000000e+00> : vector<8x32xf32>
    %41 = tpu.matmul %39, %40, %cst_23 {dimension_numbers = #tpu.dot_dimension_numbers<[1], [0], [0], [1], [0, 0, 1, 1], [], []>} : vector<8x32xf32>, vector<32x32xf32>, vector<8x32xf32> -> vector<8x32xf32>
    %c0_24 = arith.constant 0 : index
    %c0_25 = arith.constant 0 : index
    %42 = vector.load %arg8[%c0_24, %c0_25] : memref<1x32xf32, #tpu.memory_space<vmem>>, vector<1x32xf32>
    %43 = vector.broadcast %42 : vector<1x32xf32> to vector<8x32xf32>
    %44 = arith.addf %41, %43 : vector<8x32xf32>
    %cst_26 = arith.constant 0.000000e+00 : f32
    %45 = vector.broadcast %cst_26 : f32 to vector<8x32xf32>
    %46 = arith.cmpf ogt, %44, %45 : vector<8x32xf32>
    %47 = math.exp %44 : vector<8x32xf32>
    %cst_27 = arith.constant 1.000000e+00 : f32
    %48 = vector.broadcast %cst_27 : f32 to vector<8x32xf32>
    %49 = arith.subf %47, %48 : vector<8x32xf32>
    %cst_28 = arith.constant 1.67326319 : f32
    %50 = vector.broadcast %cst_28 : f32 to vector<8x32xf32>
    %51 = arith.mulf %50, %49 : vector<8x32xf32>
    %52 = arith.select %46, %44, %51 : vector<8x32xi1>, vector<8x32xf32>
    %cst_29 = arith.constant 1.05070102 : f32
    %53 = vector.broadcast %cst_29 : f32 to vector<8x32xf32>
    %54 = arith.mulf %53, %52 : vector<8x32xf32>
    %c0_30 = arith.constant 0 : index
    %c0_31 = arith.constant 0 : index
    %55 = vector.load %arg9[%c0_30, %c0_31] : memref<32x4xf32, #tpu.memory_space<vmem>>, vector<32x4xf32>
    %cst_32 = arith.constant dense<0.000000e+00> : vector<8x4xf32>
    %56 = tpu.matmul %54, %55, %cst_32 {dimension_numbers = #tpu.dot_dimension_numbers<[1], [0], [0], [1], [0, 0, 1, 1], [], []>} : vector<8x32xf32>, vector<32x4xf32>, vector<8x4xf32> -> vector<8x4xf32>
    %c0_33 = arith.constant 0 : index
    %c0_34 = arith.constant 0 : index
    %57 = vector.load %arg10[%c0_33, %c0_34] : memref<1x4xf32, #tpu.memory_space<vmem>>, vector<1x4xf32>
    %58 = vector.broadcast %57 : vector<1x4xf32> to vector<8x4xf32>
    %59 = arith.addf %56, %58 : vector<8x4xf32>
    %c0_35 = arith.constant 0 : index
    %c0_36 = arith.constant 0 : index
    %60 = vector.load %arg11[%c0_35, %c0_36] : memref<8x4xf32, #tpu.memory_space<vmem>>, vector<8x4xf32>
    tpu.vector_store %arg11[%c0_35, %c0_36], %59 {strides = array<i32>} : memref<8x4xf32, #tpu.memory_space<vmem>>, vector<8x4xf32>,
    return
  }
  func.func @transform_0(%arg0: i32) -> (i32, i32) {
    %c0_i32 = arith.constant 0 : i32
    %c0_i32_0 = arith.constant 0 : i32
    return %arg0, %c0_i32 : i32, i32
  }
  func.func @transform_1(%arg0: i32) -> (i32, i32) {
    %c0_i32 = arith.constant 0 : i32
    %c0_i32_0 = arith.constant 0 : i32
    %c0_i32_1 = arith.constant 0 : i32
    return %c0_i32, %c0_i32_0 : i32, i32
  }
  func.func @transform_2(%arg0: i32) -> (i32, i32) {
    %c0_i32 = arith.constant 0 : i32
    %c0_i32_0 = arith.constant 0 : i32
    %c0_i32_1 = arith.constant 0 : i32
    return %c0_i32, %c0_i32_0 : i32, i32
  }
  func.func @transform_3(%arg0: i32) -> (i32, i32) {
    %c0_i32 = arith.constant 0 : i32
    %c0_i32_0 = arith.constant 0 : i32
    %c0_i32_1 = arith.constant 0 : i32
    return %c0_i32, %c0_i32_0 : i32, i32
  }
  func.func @transform_4(%arg0: i32) -> (i32, i32) {
    %c0_i32 = arith.constant 0 : i32
    %c0_i32_0 = arith.constant 0 : i32
    %c0_i32_1 = arith.constant 0 : i32
    return %c0_i32, %c0_i32_0 : i32, i32
  }
  func.func @transform_5(%arg0: i32) -> (i32, i32) {
    %c0_i32 = arith.constant 0 : i32
    %c0_i32_0 = arith.constant 0 : i32
    %c0_i32_1 = arith.constant 0 : i32
    return %c0_i32, %c0_i32_0 : i32, i32
  }
  func.func @transform_6(%arg0: i32) -> (i32, i32) {
    %c0_i32 = arith.constant 0 : i32
    %c0_i32_0 = arith.constant 0 : i32
    %c0_i32_1 = arith.constant 0 : i32
    return %c0_i32, %c0_i32_0 : i32, i32
  }
  func.func @transform_7(%arg0: i32) -> (i32, i32) {
    %c0_i32 = arith.constant 0 : i32
    %c0_i32_0 = arith.constant 0 : i32
    %c0_i32_1 = arith.constant 0 : i32
    return %c0_i32, %c0_i32_0 : i32, i32
  }
  func.func @transform_8(%arg0: i32) -> (i32, i32) {
    %c0_i32 = arith.constant 0 : i32
    %c0_i32_0 = arith.constant 0 : i32
    %c0_i32_1 = arith.constant 0 : i32
    return %c0_i32, %c0_i32_0 : i32, i32
  }
  func.func @transform_9(%arg0: i32) -> (i32, i32) {
    %c0_i32 = arith.constant 0 : i32
    %c0_i32_0 = arith.constant 0 : i32
    %c0_i32_1 = arith.constant 0 : i32
    return %c0_i32, %c0_i32_0 : i32, i32
  }
  func.func @transform_10(%arg0: i32) -> (i32, i32) {
    %c0_i32 = arith.constant 0 : i32
    %c0_i32_0 = arith.constant 0 : i32
    return %arg0, %c0_i32 : i32, i32
  }
}

</mosaic_0001>

<bundles_post_ra>
// kernel: tpu_custom_call.1
= control target key start
LH: loop header
LB: loop body
LE: loop exit
PB: predicated region body
PF: predicated region fallthrough
CT: control target
= control target key end

     0   :  { %15 = vsyncpa [#allocation3], 0  ;;  %s1341_s0 = inlined_call_operand.vmem [shape: f32[16,8], index: 0, kind: input, shape index: {}]   ;;  %s1342_s1 = inlined_call_operand.hbm [shape: f32[8,64], index: 1, kind: input, shape index: {}]   ;;  %s1343_s2 = inlined_call_operand.vmem [shape: f32[1,64], index: 2, kind: input, shape index: {}]   ;;  %s1344_s3 = inlined_call_operand.hbm [shape: f32[4,64], index: 3, kind: input, shape index: {}]   ;;  %s1345_s4 = inlined_call_operand.vmem [shape: f32[32,32], index: 4, kind: input, shape index: {}]   ;;  %s1346_s5 = inlined_call_operand.vmem [shape: f32[1,32], index: 5, kind: input, shape index: {}]   ;;  %s1347_s6 = inlined_call_operand.vmem [shape: f32[32,32], index: 6, kind: input, shape index: {}]   ;;  %s1348_s7 = inlined_call_operand.vmem [shape: f32[1,32], index: 7, kind: input, shape index: {}]   ;;  %s1349_s8 = inlined_call_operand.vmem [shape: f32[32,4], index: 8, kind: input, shape index: {}]   ;;  %s1350_s9 = inlined_call_operand.vmem [shape: f32[1,4], index: 9, kind: input, shape index: {}]   ;;  %s1351_s10 = inlined_call_operand.vmem [shape: f32[16,4], index: 10, kind: output, shape index: {}]  }
   0x1   :  { %16 = vsyncpa [#allocation5], 0  ;;  %s1183_s13 = smov 0  }
   0x2 LB: > { %s1189_s14 = sadd.s32 4294967295, %s1119_s13   ;;  %p905_p0 = scmp.ge.s32.totalorder %s1119_s13, 1  ;;  %s1119_s13 = sphi %s1183_s13, %s22_s13  }
   0x3   : > { %p268_p1 = scmp.lt.s32.totalorder %s1119_s13, 3  ;;  %p1352_p2 = scmp.eq.s32.totalorder %s1189_s14, 0 }
   0x4   : > { %s1121_s16 = smov [#allocation2]   ;;  %s1122_s18 = smov [#allocation4]  }
   0x5   : > { %p1194_p3 = pnand %p905_p0, %p268_p1  ;;  %s281_s17 = sshll.u32 %s1121_s16, 4  ;;  %s282_s17 = int_to_ptr.vmem [resolvable:$true] %s281_s17 }
   0x6   : > { %s295_s19 = sshll.u32 %s1122_s18, 4  ;;  %s1049_s23 = scalar_lea.hbm %s1342_s1, 128  ;;  %s1206_s19 = int_to_ptr.vmem [resolvable:$true] %s295_s19 }
   0x7   : > { %s1354_s15 = scalar_select %p1194_p3, 1, 0 }
   0x8   : > { %p1017_p4 = pneg %p1194_p3  ;;  %p1050_p6 = scmp.ne.s32.totalorder %s1342_s1, %s1049_s23 }
   0x9   : > { %p1056_p10 = scmp.lt.u32.totalorder %s1049_s23, %s1342_s1 }
   0xa   : > { %p1202_p5 = pnand %p1352_p2, %p1017_p4 }
   0xc   : > { %p1051_p7 = pneg %p1202_p5 }
   0xe   : > { %p1052_p8 = pnand %p1051_p7, %p1050_p6 }
  0x10   : > { %p1053_p9 = pneg %p1052_p8 }
  0x12   : > { %p1058_p11 = pnand %p1056_p10, %p1053_p9 }
  0x14   : > { %1061 = shalt.err (!%p1058_p11)
}
  0x15   : > { %s1062_s28 = scalar_lea.vmem %s282_s17, 128  ;;  %p1070_p1 = scmp.lt.s32.totalorder %s282_s17, %s282_s17 }
  0x16   : > { %p1063_p12 = scmp.ne.s32.totalorder %s282_s17, %s1062_s28  ;;  %p1071_p4 = scmp.lt.s32.totalorder %s1062_s28, %s1062_s28 }
  0x18   : > { %p1065_p13 = pnand %p1063_p12, %p1051_p7  ;;  %p1072_p2 = por %p1071_p4, %p1070_p1 }
  0x1a   : > { %p1066_p0 = pneg %p1065_p13 }
  0x1c   : > { %p1073_p3 = pnand %p1072_p2, %p1066_p0 }
  0x1e   : > { %1076 = shalt.err (!%p1073_p3)
}
  0x1f   : > { %1020 = dma.hbm_to_vmem [thread:$0]  (!%p1202_p5), %s1342_s1, 128, %s282_s17, [#allocation3]  }
  0x20   : > { %s1077_s16 = scalar_lea.hbm %s1344_s3, 64 }
  0x21   : > { %p1078_p6 = scmp.ne.s32.totalorder %s1344_s3, %s1077_s16  ;;  %p1084_p3 = scmp.lt.u32.totalorder %s1077_s16, %s1344_s3 }
  0x23   : > { %p1080_p8 = pnand %p1078_p6, %p1051_p7 }
  0x25   : > { %p1081_p2 = pneg %p1080_p8 }
  0x27   : > { %p1086_p9 = pnand %p1084_p3, %p1081_p2 }
  0x29   : > { %1089 = shalt.err (!%p1086_p9)
}
  0x2a   : > { %s1090_s17 = scalar_lea.vmem %s1206_s19, 64  ;;  %p1098_p13 = scmp.lt.s32.totalorder %s1206_s19, %s1206_s19 }
  0x2b   : > { %p1091_p10 = scmp.ne.s32.totalorder %s1206_s19, %s1090_s17  ;;  %p1099_p0 = scmp.lt.s32.totalorder %s1090_s17, %s1090_s17 }
  0x2d   : > { %p1093_p11 = pnand %p1091_p10, %p1051_p7  ;;  %p1100_p1 = por %p1099_p0, %p1098_p13 }
  0x2f   : > { %p1094_p12 = pneg %p1093_p11 }
  0x31   : > { %p1101_p4 = pnand %p1100_p1, %p1094_p12 }
  0x33   : > { %1104 = shalt.err (!%p1101_p4)
}
  0x34   : > { %1023 = dma.hbm_to_vmem [thread:$0]  (!%p1202_p5), %s1344_s3, 64, %s1206_s19, [#allocation5]  }
  0x35   : > { %p1356_p6 = scmp.ne.s32.totalorder %s1354_s15, 0 }
  0x36   : > { %p1357_p8 = scmp.eq.s32.totalorder (!%p1356_p6), %s1189_s14, 0 }
  0x37   : > { %333 = sbr.rel (%p1356_p6) target bundleno = 1115 (0x45b), region = 60 }
  0x3e   : > { %1110 = dma.done.wait (%p1357_p8), [#allocation3], 128   ;;  %p1358_p7 = pmov %p1357_p8 }
  0x40   : > { %1112 = vsyncadd (%p1358_p7), [#allocation3], 4294967168  ;;  %p1359_p2 = pmov %p1358_p7 }
  0x42   : > { %1114 = dma.done.wait (%p1359_p2), [#allocation5], 64   ;;  %p1360_p3 = pmov %p1359_p2 }
  0x43   : > { %p373_p9 = scmp.lt.s32.totalorder %s1189_s14, 1  ;;  %v1123_v0 = vmov 0.0   ;;  %vm1124_vm0 = vmmov 0   ;;  %vm393_vm1 = vcmask 1043456   ;;  %v388_v2 = vld [vmem:[#allocation4] sm:$0xf] }
  0x44   : > { %1116 = vsyncadd (%p1360_p3), [#allocation5], 4294967232  ;;  %948 = vmatprep.subr.mxu1 %v1123_v0  ;;  %950 = vmatprep.mubr.msk.f32.mxu1 %vm1124_vm0, %v1123_v0  ;;  %s1125_s27 = smov 124   ;;  %vm389_vm2 = vcmask 31744   ;;  %v387_v5 = vld [vmem:[#allocation2] sm:$0xff]  ;;  %vm467_vm3 = vcmask 64512  }
  0x45   : > { %s1362_s14 = smov (!%p373_p9, %s1189_s14), 1  ;;  %966 = vmatprep.mubr.msk.f32.mxu0 %vm1124_vm0, %v1123_v0  ;;  %949 = vmatpush3.msk.msra.mxu1 %vm393_vm1, %v388_v2  ;;  %v555_v6 = vld [vmem:[%s1345_s4] sm:$0xff]  ;;  %v556_v7 = vld [vmem:[%s1345_s4 + $0x8] sm:$0xff]  ;;  %v557_v8 = vld [vmem:[%s1345_s4 + $0x10] sm:$0xff]  ;;  %v1126_v9 = vmov 0.0|0.0   ;;  %s1127_s17 = smov 96  }
  0x46   : > { %s912_s15 = sshll.u32 %s1362_s14, 3  ;;  %953 = vmatprep.subr.mxu1 %v1123_v0  ;;  %991 = vmatprep.subr.bf16.mxu0 %v1126_v9  ;;  %v992_v10 = vpack.c.bf16 %v556_v7, %v555_v6  ;;  %v558_v11 = vld [vmem:[%s1345_s4 + $0x18] sm:$0xff]  ;;  %v917_v16 = vld [vmem:[%s1343_s2] ss:$0 sm:$0xff]  ;;  %vm566_vm5 = vcmask 261120   ;;  %v653_v27 = vld [vmem:[%s1347_s6 + $0x8] sm:$0xff] }
  0x47   : > { %s376_s26 = scalar_lea.vmem %s1341_s0, %s912_s15  ;;  %v995_v12 = vpack.c.bf16 %v558_v11, %v557_v8  ;;  %v652_v26 = vld [vmem:[%s1347_s6] sm:$0xff]  ;;  %v654_v29 = vld [vmem:[%s1347_s6 + $0x10] sm:$0xff]  ;;  %v655_v30 = vld [vmem:[%s1347_s6 + $0x18] sm:$0xff]  ;;  %s380_s29 = scalar_lea.vmem %s1351_s10, %s912_s15 }
  0x48   : > { %v381_v1 = vld [vmem:[%s376_s26] sm:$0xff]  ;;  %993 = vmatpush3.bf16.msra.mxu0 %v992_v10  ;;  %v998_v28 = vpack.c.bf16 %v653_v27, %v652_v26  ;;  %v1001_v31 = vpack.c.bf16 %v655_v30, %v654_v29  ;;  %v744_v45 = vld [vmem:[%s1349_s8 + $0x8] sm:$0xff]  ;;  %v745_v47 = vld [vmem:[%s1349_s8 + $0x10] sm:$0xff] }
  0x49   : > { %383 = vrot.lane.b32.xlu0 %v381_v1, %s1125_s27  ;;  %994 = vmatprep.subr.bf16.mxu0 %v1126_v9  ;;  %v919_v32 = vld [vmem:[%s1346_s5] ss:$0 sm:$0xff]  ;;  %v746_v48 = vld [vmem:[%s1349_s8 + $0x18] sm:$0xff] }
  0x4a   : > { %v743_v44 = vld [vmem:[%s1349_s8] sm:$0xff]  ;;  %v1007_v49 = vpack.c.bf16 %v746_v48, %v745_v47 }
  0x4b   : > { %v1004_v46 = vpack.c.bf16 %v744_v45, %v743_v44  ;;  %v922_v50 = vld [vmem:[%s1348_s7] ss:$0 sm:$0xff] }
  0x4c   : > { %996 = vmatpush3.bf16.msra.mxu0 %v995_v12  ;;  %v925_v60 = vld [vmem:[%s1350_s9] ss:$0 sm:$0xff] }
  0x4d   : > { %1003 = vmatprep.subr.bf16.mxu0 %v1126_v9 }
  0xbb   : > { %v384_v3 = vpop.permute.xlu0 %383 }
  0xbc   : > { %v386_v4 = vmul.f32 %v384_v3, %v381_v1 }
  0xbe   : > { %951 = vmatmul.mubr.msk.f32.vlgmr.msra.gmra.mrb[0].mxu1 %vm389_vm2, %v386_v4 }
  0xbf   : > { %954 = vmatpush3.msra.mxu1 %v387_v5  ;;  %955 = vmatprep.mubr.msk.f32.mxu1 %vm1124_vm0, %v1123_v0 }
  0xc0   : > { %997 = vmatprep.subr.bf16.mxu1 %v1126_v9 }
  0xc2   : > { %956 = vmatmul.mubr.msk.f32.vlgmr.msra.gmra.mrb[2].mxu1 %vm467_vm3, %v381_v1 }
  0xc3   : > { %977 = vmatprep.mubr.msk.f32.mxu1 %vm1124_vm0, %v1123_v0  ;;  %999 = vmatpush3.bf16.msra.mxu1 %v998_v28 }
  0xc4   : > { %1000 = vmatprep.subr.bf16.mxu1 %v1126_v9 }
  0xc7   : > { %1002 = vmatpush3.bf16.msra.mxu1 %v1001_v31 }
 0x191   : > { %v463_v13 = vpop.f32.mrb[0].mxu1 }
 0x192   : > { %v952_v14 = vpop.f32.mrb[1].mxu1 }
 0x195   : > { %v536_v15 = vpop.f32.mrb[2].mxu1 }
 0x196   : > { %v537_v17 = vadd.f32 %v536_v15, %v463_v13  ;;  %v957_v18 = vpop.f32.mrb[3].mxu1 }
 0x198   : > { %v547_v19 = vadd.f32 %v917_v16, %v537_v17 }
 0x19a   : > { %v549_v20 = vmul.f32 1.442695, %v547_v19  ;;  %648 = vrot.lane.b32.xlu0 %v547_v19, %s1127_s17  ;;  %vm548_vm4 = vcmp.gt.f32.partialorder %v547_v19, 0.0 }
 0x19c   : > { %1043 = vpow2.f32 %v549_v20 }
 0x1a6   : > { %v1044_v21 = vpop.eup %1043 }
 0x1a7   : > { %v918_v22 = vadd.f32 -1.0, %v1044_v21 }
 0x1a9   : > { %v552_v23 = vmul.f32 1.6732632, %v918_v22 }
 0x1ab   : > { %v553_v24 = vsel %vm548_vm4, %v547_v19, %v552_v23 }
 0x1ac   : > { %v554_v25 = vmul.f32 1.050701, %v553_v24 }
 0x1ae   : > { %967 = vmatmul.mubr.msk.f32.vlgmr.msra.gmra.mrb[0].mxu0 %vm566_vm5, %v554_v25 }
 0x1af   : > { %988 = vmatprep.mubr.msk.f32.mxu0 %vm1124_vm0, %v1123_v0  ;;  %1005 = vmatpush3.bf16.msra.mxu0 %v1004_v46 }
 0x1b0   : > { %1006 = vmatprep.subr.bf16.mxu0 %v1126_v9 }
 0x1b3   : > { %1008 = vmatpush3.bf16.msra.mxu0 %v1007_v49 }
 0x20c   : > { %v649_v42 = vpop.permute.xlu0 %648 }
 0x281   : > { %v636_v33 = vpop.f32.mrb[0].mxu0 }
 0x282   : > { %v637_v34 = vadd.f32 %v919_v32, %v636_v33  ;;  %v968_v35 = vpop.f32.mrb[1].mxu0 }
 0x284   : > { %v641_v36 = vmul.f32 1.442695, %v637_v34  ;;  %vm640_vm6 = vcmp.gt.f32.partialorder %v637_v34, 0.0 }
 0x286   : > { %1045 = vpow2.f32 %v641_v36 }
 0x290   : > { %v1046_v37 = vpop.eup %1045 }
 0x291   : > { %v921_v38 = vadd.f32 -1.0, %v1046_v37 }
 0x293   : > { %v644_v39 = vmul.f32 1.6732632, %v921_v38 }
 0x295   : > { %v645_v40 = vsel %vm640_vm6, %v637_v34, %v644_v39 }
 0x296   : > { %v646_v41 = vmul.f32 1.050701, %v645_v40 }
 0x298   : > { %v651_v43 = vadd.f32 %v649_v42, %v646_v41 }
 0x29a   : > { %978 = vmatmul.mubr.msk.f32.vlgmr.msra.gmra.mrb[4].mxu1 %vm566_vm5, %v651_v43 }
 0x36d   : > { %v732_v51 = vpop.f32.mrb[4].mxu1 }
 0x36e   : > { %v733_v52 = vadd.f32 %v922_v50, %v732_v51  ;;  %v979_v53 = vpop.f32.mrb[5].mxu1 }
 0x370   : > { %v737_v54 = vmul.f32 1.442695, %v733_v52  ;;  %vm736_vm7 = vcmp.gt.f32.partialorder %v733_v52, 0.0 }
 0x372   : > { %1047 = vpow2.f32 %v737_v54 }
 0x37c   : > { %v1048_v55 = vpop.eup %1047 }
 0x37d   : > { %v924_v56 = vadd.f32 -1.0, %v1048_v55 }
 0x37f   : > { %v740_v57 = vmul.f32 1.6732632, %v924_v56 }
 0x381   : > { %v741_v58 = vsel %vm736_vm7, %v733_v52, %v740_v57 }
 0x382   : > { %v742_v59 = vmul.f32 1.050701, %v741_v58 }
 0x384   : > { %989 = vmatmul.mubr.msk.f32.vlgmr.msra.gmra.mrb[2].mxu0 %vm566_vm5, %v742_v59 }
 0x457   : > { %v823_v61 = vpop.f32.mrb[2].mxu0 }
 0x458   : > { %v824_v62 = vadd.f32 %v925_v60, %v823_v61  ;;  %v990_v63 = vpop.f32.mrb[3].mxu0 }
 0x45a   : > { %827 = vst.msk [vmem:[%s380_s29] sm:$0xff] %vm389_vm2, %v824_v62 }
 0x45b PF: > { %s22_s13 = sadd.s32 1, %s1119_s13  }
 0x45c   : > { %p19_p5 = scmp.ge.s32.totalorder %s22_s13, 4  }
 0x45e   :  { %21 = sbr.rel (!%p19_p5) target bundleno = 2 (0x2), region = 99 }
 0x465   :  { %847 = vsyncpa [#allocation3], 1 }
 0x466   :  { %849 = vsyncpa [#allocation3 + $0x1], 1 }
 0x467   :  { %850 = vsyncpa [#allocation5], 1 }

</bundles_post_ra>
